<compile_context>
chip_gen: v6e
topology: v6e:2x2x1
jax: 0.10.0
libtpu: 0.0.40
codegen_flags: <defaults>
</compile_context>

<pallas_src>
import jax
import jax.numpy as jnp
from jax.experimental import pallas as pl
from jax.experimental.pallas import tpu as pltpu


# ----------------------------- small helpers --------------------------------

def _vmem_limit_bytes(per_step_bytes):
    """Explicit scoped-VMEM request: generous headroom over the per-step
    working set, capped below v7x's 64 MiB physical VMEM so the same plan
    compiles on v5e / v6e / v7x."""
    return int(min(max(4 * per_step_bytes, 16 * 1024 * 1024), 60 * 1024 * 1024))


# --------------------------- kernel 1: 1x1 conv ------------------------------

def _conv1x1_kernel(x_ref, w_ref, b_ref, f_ref):
    # x: (Cin, Hf*Wf)   w: (Cout, Cin)   b: (Cout, 1)   f: (Cout, Hf*Wf)
    f_ref[...] = (jnp.dot(w_ref[...], x_ref[...],
                          preferred_element_type=jnp.float32)
                  + b_ref[...]).astype(f_ref.dtype)


def conv1x1(x_nchw, weight, bias, *, compute_dtype=jnp.float32):
    """1x1 conv (pure channel mix).  NCHW in, flat (B, Cout, Hf*Wf) f32 out.

    x is consumed as (B, Cin, Hf*Wf) -- a free row-major view of NCHW -- and
    the result is written lane-dense with Hf*Wf lanes (unmasked stores)."""
    B, Cin, Hf, Wf = x_nchw.shape
    Cout = weight.shape[0]
    HW = Hf * Wf
    csize = jnp.dtype(compute_dtype).itemsize

    x_flat = x_nchw.reshape(B, Cin, HW).astype(compute_dtype)
    w = weight.astype(compute_dtype)
    b = bias.reshape(Cout, 1).astype(jnp.float32)

    per_step = (2 * (Cin * HW * csize + Cout * HW * 4)
                + 2 * Cout * (Cin * csize + 4))
    return pl.pallas_call(
        _conv1x1_kernel,
        out_shape=jax.ShapeDtypeStruct((B, Cout, HW), jnp.float32),
        grid_spec=pltpu.PrefetchScalarGridSpec(
            num_scalar_prefetch=0,
            grid=(B,),
            in_specs=[
                pl.BlockSpec((None, Cin, HW), lambda i: (i, 0, 0)),
                pl.BlockSpec((Cout, Cin), lambda i: (0, 0)),
                pl.BlockSpec((Cout, 1), lambda i: (0, 0)),
            ],
            out_specs=pl.BlockSpec((None, Cout, HW), lambda i: (i, 0, 0)),
        ),
        compiler_params=pltpu.CompilerParams(
            dimension_semantics=("parallel",),
            vmem_limit_bytes=_vmem_limit_bytes(per_step)),
    )(x_flat, w, b)


# -------- kernel 2: crop/pad + bilinear resize (separable, per (b, c)) -------

def _crop_resize_kernel(f_ref, rh_ref, rwt_ref, o_ref):
    # f: (Hf, Wf)   rh: (Hout, Hf)   rwt: (Wf, Wout)   o: (Hout, Wout)
    fm = f_ref[...].astype(rh_ref.dtype)
    u = jnp.dot(rh_ref[...], fm, preferred_element_type=jnp.float32)   # H axis
    o_ref[...] = jnp.dot(u.astype(rwt_ref.dtype), rwt_ref[...],
                         preferred_element_type=jnp.float32)           # W axis


def crop_resize(fmap_flat, Hf, Wf, rh, rwt, *, compute_dtype=jnp.float32):
    """Apply (center-crop | zero-pad) + bilinear resize via the folded
    per-axis operators Rh [Hout, Hf] and Rw^T [Wf, Wout]."""
    B, Cout, HW = fmap_flat.shape
    assert HW == Hf * Wf
    Hout = rh.shape[0]
    Wout = rwt.shape[1]
    csize = jnp.dtype(compute_dtype).itemsize

    f_view = fmap_flat.reshape(B * Cout, Hf, Wf)     # free row-major HBM view
    rh_c = rh.astype(compute_dtype)
    rwt_c = rwt.astype(compute_dtype)

    per_step = (2 * (Hf * Wf * 4 + Hout * Wout * 4)
                + 2 * (Hout * Hf + Wf * Wout) * csize)
    out = pl.pallas_call(
        _crop_resize_kernel,
        out_shape=jax.ShapeDtypeStruct((B * Cout, Hout, Wout), jnp.float32),
        grid_spec=pltpu.PrefetchScalarGridSpec(
            num_scalar_prefetch=0,
            grid=(B * Cout,),
            in_specs=[
                pl.BlockSpec((None, Hf, Wf), lambda i: (i, 0, 0)),
                pl.BlockSpec((Hout, Hf), lambda i: (0, 0)),
                pl.BlockSpec((Wf, Wout), lambda i: (0, 0)),
            ],
            out_specs=pl.BlockSpec((None, Hout, Wout), lambda i: (i, 0, 0)),
        ),
        compiler_params=pltpu.CompilerParams(
            dimension_semantics=("parallel",),
            vmem_limit_bytes=_vmem_limit_bytes(per_step)),
    )(f_view, rh_c, rwt_c)
    return out.reshape(B, Cout, Hout, Wout)


# ------------- crop/pad + resize folded into per-axis operators --------------

def _resize_matrix(out_size, in_size):
    """Row-interpolation matrix matching F.interpolate(mode='bilinear',
    align_corners=False): src = (dst + 0.5) * (in/out) - 0.5, clamped at 0,
    edge-replicated at the top end."""
    scale = in_size / out_size
    dst = jnp.arange(out_size, dtype=jnp.float32)
    src = jnp.maximum((dst + 0.5) * scale - 0.5, 0.0)
    i0 = jnp.minimum(jnp.floor(src).astype(jnp.int32), in_size - 1)
    i1 = jnp.minimum(i0 + 1, in_size - 1)
    l1 = src - i0.astype(jnp.float32)
    l0 = 1.0 - l1
    rows = jnp.arange(out_size)
    m = jnp.zeros((out_size, in_size), jnp.float32)
    m = m.at[rows, i0].add(l0)
    m = m.at[rows, i1].add(l1)
    return m


def _axis_operator(out_size, in_size, crop_factor):
    """[out_size, in_size] operator equivalent to (center-crop | zero-pad) then
    bilinear resize along one axis.  Uses the same int() arithmetic as the
    PyTorch crop_or_pad_feature, so sizes match the reference exactly."""
    if crop_factor <= 1:
        new_in = int(in_size * crop_factor)
        start = (in_size - new_in) // 2
        r = _resize_matrix(out_size, new_in)            # resize on cropped size
        full = jnp.zeros((out_size, in_size), jnp.float32)
        return full.at[:, start:start + new_in].set(r)  # cropped-away cols -> 0
    else:
        pad = int(in_size * (crop_factor - 1))
        pad_lo = pad // 2
        r = _resize_matrix(out_size, in_size + pad)     # resize on padded size
        return r[:, pad_lo:pad_lo + in_size]            # zero-pad cols drop out


# ------------------------------ BevSegHead (JAX) -----------------------------

class BevSegHead:
    def __init__(self, target, H, W, input_dim, dynamic_class, static_class,
                 seg_res, cav_range, key, compute_dtype=jnp.float32):
        self.target = target
        self.H = H
        self.W = W
        self.seg_res = seg_res
        self.cav_range = cav_range
        self.dynamic_class = dynamic_class
        self.static_class = static_class
        self.compute_dtype = compute_dtype

        kd_w, kd_b, ks_w, ks_b = jax.random.split(key, 4)
        bound = 1.0 / (input_dim ** 0.5)
        # Deterministic synthetic parameters (Conv2d default uniform range).
        self.dyn_w = jax.random.uniform(kd_w, (dynamic_class, input_dim),
                                        jnp.float32, -bound, bound)
        self.dyn_b = jax.random.uniform(kd_b, (dynamic_class,),
                                        jnp.float32, -bound, bound)
        self.sta_w = jax.random.uniform(ks_w, (static_class, input_dim),
                                        jnp.float32, -bound, bound)
        self.sta_b = jax.random.uniform(ks_b, (static_class,),
                                        jnp.float32, -bound, bound)
        # Concatenated heads for target='both': one conv + one resize pass.
        self.cat_w = jnp.concatenate([self.dyn_w, self.sta_w], axis=0)
        self.cat_b = jnp.concatenate([self.dyn_b, self.sta_b], axis=0)

        self.cal_crop_stat()
        self._op_cache = {}

    def cal_crop_stat(self):
        seg_range_H = self.H * self.seg_res
        seg_range_W = self.W * self.seg_res
        range_H = self.cav_range[4] - self.cav_range[1]
        range_W = self.cav_range[3] - self.cav_range[0]
        self.crop_factor_H = seg_range_H / range_H
        self.crop_factor_W = seg_range_W / range_W

    # ---- cached per-axis operators (keyed on geometry, not just Hf/Wf) ------
    def _get_ops(self, Hf, Wf):
        key = (Hf, Wf, self.H, self.W, self.crop_factor_H, self.crop_factor_W)
        if key not in self._op_cache:
            rh = _axis_operator(self.H, Hf, self.crop_factor_H)    # [H, Hf]
            rw = _axis_operator(self.W, Wf, self.crop_factor_W)    # [W, Wf]
            self._op_cache[key] = (rh, rw.T)                       # Rh, Rw^T
        return self._op_cache[key]

    # ---- pure-jnp crop/pad (used only by the reference check) ---------------
    def crop_or_pad_feature(self, feature_map):
        B, C, H, W = feature_map.shape
        if self.crop_factor_H <= 1:
            new_H = int(H * self.crop_factor_H)
            start_H = (H - new_H) // 2
            end_H = start_H + new_H
        else:
            pad_H = int(H * (self.crop_factor_H - 1))
            pad_top = pad_H // 2
            pad_bottom = pad_H - pad_top
        if self.crop_factor_W <= 1:
            new_W = int(W * self.crop_factor_W)
            start_W = (W - new_W) // 2
            end_W = start_W + new_W
        else:
            pad_W = int(W * (self.crop_factor_W - 1))
            pad_left = pad_W // 2
            pad_right = pad_W - pad_left

        if self.crop_factor_H <= 1 and self.crop_factor_W <= 1:
            return feature_map[:, :, start_H:end_H, start_W:end_W]
        elif self.crop_factor_H > 1 and self.crop_factor_W > 1:
            return jnp.pad(feature_map, ((0, 0), (0, 0),
                                         (pad_top, pad_bottom),
                                         (pad_left, pad_right)))
        elif self.crop_factor_H <= 1 and self.crop_factor_W > 1:
            cropped = feature_map[:, :, start_H:end_H, :]
            return jnp.pad(cropped, ((0, 0), (0, 0), (0, 0),
                                     (pad_left, pad_right)))
        else:
            cropped = feature_map[:, :, :, start_W:end_W]
            return jnp.pad(cropped, ((0, 0), (0, 0),
                                     (pad_top, pad_bottom), (0, 0)))

    # ---- forward -------------------------------------------------------------
    def forward(self, x, return_cls=False):
        B, _, Hf, Wf = x.shape
        rh, rwt = self._get_ops(Hf, Wf)
        cdt = self.compute_dtype
        ori_x = None

        if self.target == 'dynamic':
            fmap = conv1x1(x, self.dyn_w, self.dyn_b, compute_dtype=cdt)
            dynamic_map = crop_resize(fmap, Hf, Wf, rh, rwt, compute_dtype=cdt)
            static_map = jnp.zeros_like(dynamic_map)
            if return_cls:
                ori_x = fmap.reshape(B, self.dynamic_class, Hf, Wf)
        elif self.target == 'static':
            fmap = conv1x1(x, self.sta_w, self.sta_b, compute_dtype=cdt)
            static_map = crop_resize(fmap, Hf, Wf, rh, rwt, compute_dtype=cdt)
            dynamic_map = jnp.zeros_like(static_map)
            # TODO(synk): PyTorch reference reads an undefined `dynamic_map`
            # when return_cls=True with target='static' (upstream bug); here
            # ori_x is simply not produced for that path.
        else:  # 'both'
            fmap = conv1x1(x, self.cat_w, self.cat_b, compute_dtype=cdt)
            out = crop_resize(fmap, Hf, Wf, rh, rwt, compute_dtype=cdt)
            dynamic_map = out[:, :self.dynamic_class]
            static_map = out[:, self.dynamic_class:]
            if return_cls:
                ori_x = fmap.reshape(B, -1, Hf, Wf)[:, :self.dynamic_class]

        output_dict = {'static_seg': static_map, 'dynamic_seg': dynamic_map}
        if return_cls:
            return output_dict, ori_x
        return output_dict


# ----------------------------- reference (pure JAX) --------------------------

def _ref_head(head, x, w, b):
    fmap = jnp.einsum('bchw,oc->bohw', x, w) + b[None, :, None, None]
    cropped = head.crop_or_pad_feature(fmap)
    _, _, Hin, Win = cropped.shape
    rh = _resize_matrix(head.H, Hin)
    rw = _resize_matrix(head.W, Win)
    return jnp.einsum('oh,bchw,pw->bcop', rh, cropped, rw)


# ----------------------------------- main -------------------------------------

if __name__ == "__main__":
    key = jax.random.PRNGKey(0)
    k_param, k_x = jax.random.split(key)

    B, C_in, Hf, Wf = 2, 16, 16, 16
    H = W = 32
    dynamic_class, static_class = 2, 3
    seg_res = 2.4
    cav_range = [-51.2, -51.2, -3.0, 51.2, 51.2, 1.0]   # -> crop factor 0.75

    x = jax.random.normal(k_x, (B, C_in, Hf, Wf), jnp.float32)

    # ---- f32 path, target='both', return_cls=True ----------------------------
    head = BevSegHead('both', H, W, C_in, dynamic_class, static_class,
                      seg_res, cav_range, k_param)
    out, ori_x = head.forward(x, return_cls=True)
    jax.block_until_ready((out, ori_x))

    ref_dyn = _ref_head(head, x, head.dyn_w, head.dyn_b)
    ref_sta = _ref_head(head, x, head.sta_w, head.sta_b)
    ref_ori = (jnp.einsum('bchw,oc->bohw', x, head.dyn_w)
               + head.dyn_b[None, :, None, None])

    assert out['dynamic_seg'].shape == (B, dynamic_class, H, W)
    assert out['static_seg'].shape == (B, static_class, H, W)
    assert ori_x.shape == (B, dynamic_class, Hf, Wf)
    assert jnp.allclose(out['dynamic_seg'], ref_dyn, atol=1e-4, rtol=1e-4)
    assert jnp.allclose(out['static_seg'], ref_sta, atol=1e-4, rtol=1e-4)
    assert jnp.allclose(ori_x, ref_ori, atol=1e-4, rtol=1e-4)

    # ---- f32 path, target='dynamic', return_cls=False ------------------------
    head_dyn = BevSegHead('dynamic', H, W, C_in, dynamic_class, static_class,
                          seg_res, cav_range, k_param)
    out_dyn = head_dyn.forward(x)
    jax.block_until_ready(out_dyn)
    assert jnp.allclose(out_dyn['dynamic_seg'], ref_dyn, atol=1e-4, rtol=1e-4)
    assert jnp.allclose(out_dyn['static_seg'], 0.0)

    # ---- bf16-operand / f32-accumulate path (v6e/v7x MXU), looser tolerance --
    head_bf16 = BevSegHead('both', H, W, C_in, dynamic_class, static_class,
                           seg_res, cav_range, k_param,
                           compute_dtype=jnp.bfloat16)
    out_bf16 = head_bf16.forward(x)
    jax.block_until_ready(out_bf16)
    assert jnp.allclose(out_bf16['dynamic_seg'], ref_dyn, atol=5e-2, rtol=5e-2)
    assert jnp.allclose(out_bf16['static_seg'], ref_sta, atol=5e-2, rtol=5e-2)

    print("KERNEL_OK")
</pallas_src>

<mosaic_0001>
module attributes {stable_mosaic.version = 11 : i64} {
  func.func @_conv1x1_kernel(%arg0: i32, %arg1: memref<1x16x256xf32, #tpu.memory_space<vmem>>, %arg2: memref<5x16xf32, #tpu.memory_space<vmem>>, %arg3: memref<5x1xf32, #tpu.memory_space<vmem>>, %arg4: memref<1x5x256xf32, #tpu.memory_space<vmem>>) attributes {dimension_semantics = [#tpu.dimension_semantics<parallel>], iteration_bounds = array<i64: 2>, scalar_prefetch = 0 : i64, scratch_operands = 0 : i64, tpu.core_type = #tpu.core_type<tc>, window_params = [{transform_indices = @transform_0, window_bounds = array<i64: 1, 16, 256>}, {pipeline_mode = #tpu.pipeline_mode<synchronous>, transform_indices = @transform_1, window_bounds = array<i64: 5, 16>}, {pipeline_mode = #tpu.pipeline_mode<synchronous>, transform_indices = @transform_2, window_bounds = array<i64: 5, 1>}, {transform_indices = @transform_3, window_bounds = array<i64: 1, 5, 256>}]} {
    %c0 = arith.constant 0 : index
    %c0_0 = arith.constant 0 : index
    %0 = vector.load %arg2[%c0, %c0_0] : memref<5x16xf32, #tpu.memory_space<vmem>>, vector<5x16xf32>
    %c0_1 = arith.constant 0 : index
    %c0_2 = arith.constant 0 : index
    %c0_3 = arith.constant 0 : index
    %1 = vector.load %arg1[%c0_1, %c0_2, %c0_3] : memref<1x16x256xf32, #tpu.memory_space<vmem>>, vector<1x16x256xf32>
    %2 = vector.shape_cast %1 : vector<1x16x256xf32> to vector<16x256xf32>
    %cst = arith.constant dense<0.000000e+00> : vector<5x256xf32>
    %3 = tpu.matmul %0, %2, %cst {dimension_numbers = #tpu.dot_dimension_numbers<[1], [0], [0], [1], [0, 0, 1, 1], [], []>} : vector<5x16xf32>, vector<16x256xf32>, vector<5x256xf32> -> vector<5x256xf32>
    %c0_4 = arith.constant 0 : index
    %c0_5 = arith.constant 0 : index
    %4 = vector.load %arg3[%c0_4, %c0_5] : memref<5x1xf32, #tpu.memory_space<vmem>>, vector<5x1xf32>
    %5 = vector.broadcast %4 : vector<5x1xf32> to vector<5x256xf32>
    %6 = arith.addf %3, %5 : vector<5x256xf32>
    %c0_6 = arith.constant 0 : index
    %c0_7 = arith.constant 0 : index
    %c0_8 = arith.constant 0 : index
    %7 = vector.load %arg4[%c0_6, %c0_7, %c0_8] : memref<1x5x256xf32, #tpu.memory_space<vmem>>, vector<1x5x256xf32>
    %8 = vector.shape_cast %7 : vector<1x5x256xf32> to vector<5x256xf32>
    %9 = vector.shape_cast %6 : vector<5x256xf32> to vector<1x5x256xf32>
    tpu.vector_store %arg4[%c0_6, %c0_7, %c0_8], %9 {strides = array<i32>} : memref<1x5x256xf32, #tpu.memory_space<vmem>>, vector<1x5x256xf32>,
    return
  }
  func.func @transform_0(%arg0: i32) -> (i32, i32, i32) {
    %c0_i32 = arith.constant 0 : i32
    %c0_i32_0 = arith.constant 0 : i32
    %c0_i32_1 = arith.constant 0 : i32
    return %arg0, %c0_i32, %c0_i32_0 : i32, i32, i32
  }
  func.func @transform_1(%arg0: i32) -> (i32, i32) {
    %c0_i32 = arith.constant 0 : i32
    %c0_i32_0 = arith.constant 0 : i32
    %c0_i32_1 = arith.constant 0 : i32
    return %c0_i32, %c0_i32_0 : i32, i32
  }
  func.func @transform_2(%arg0: i32) -> (i32, i32) {
    %c0_i32 = arith.constant 0 : i32
    %c0_i32_0 = arith.constant 0 : i32
    %c0_i32_1 = arith.constant 0 : i32
    return %c0_i32, %c0_i32_0 : i32, i32
  }
  func.func @transform_3(%arg0: i32) -> (i32, i32, i32) {
    %c0_i32 = arith.constant 0 : i32
    %c0_i32_0 = arith.constant 0 : i32
    %c0_i32_1 = arith.constant 0 : i32
    return %arg0, %c0_i32, %c0_i32_0 : i32, i32, i32
  }
}

</mosaic_0001>

<bundles_post_ra>
// kernel: tpu_custom_call.1
= control target key start
LH: loop header
LB: loop body
LE: loop exit
PB: predicated region body
PF: predicated region fallthrough
CT: control target
= control target key end

     0   :  { %8 = vsyncpa [#allocation3], 0  ;;  %s601_s0 = inlined_call_operand.hbm [shape: f32[2,16,256], index: 0, kind: input, shape index: {}]   ;;  %s602_s1 = inlined_call_operand.vmem [shape: f32[5,16], index: 1, kind: input, shape index: {}]   ;;  %s603_s2 = inlined_call_operand.vmem [shape: f32[5,1], index: 2, kind: input, shape index: {}]   ;;  %s604_s3 = inlined_call_operand.vmem [shape: f32[2,5,256], index: 3, kind: output, shape index: {}]  }
   0x1   :  { %10 = vsyncpa [#allocation3 + $0x1], 0  ;;  %s494_s12 = smov 0   ;;  %s496_s13 = smov 0  }
   0x2   :  { %s498_s14 = smov 0   ;;  %s500_s15 = smov 0  }
   0x3 LB: > { %s513_s16 = sadd.s32 4294967295, %s467_s15   ;;  %s516_s17 = sadd.s32 1, %s467_s15   ;;  %s467_s15 = sphi %s500_s15, %s613_s15   ;;  %s463_s14 = sphi %s498_s14, %s612_s14   ;;  %s459_s13 = sphi %s496_s13, %s611_s13   ;;  %s455_s12 = sphi %s494_s12, %s610_s12  }
   0x4   : > { %s20_s18 = ssub.s32 %s467_s15, %s516_s17  ;;  %s23_s19 = sadd.s32 1, %s463_s14 }
   0x5   : > { %p21_p0 = scmp.eq.s32.totalorder %s20_s18, 0  ;;  %p30_p1 = scmp.ne.s32.totalorder %s463_s14, %s459_s13 }
   0x6   : > { %p31_p2 = scmp.eq.s32.totalorder %s467_s15, 0  ;;  %p36_p3 = scmp.ne.s32.totalorder %s459_s13, %s455_s12 }
   0x7   : > { %s526_s20 = scalar_select %p21_p0, %s463_s14, %s23_s19  }
   0x8   : > { %p32_p4 = por %p31_p2, %p30_p1  ;;  %p37_p5 = scmp.eq.s32.totalorder %s513_s16, 0 }
   0x9   : > { %p367_p6 = scmp.lt.s32.totalorder %s467_s15, 2  ;;  %s134_s22 = sand.u32 1, %s463_s14  }
   0xa   : > { %p530_p7 = por %p37_p5, %p36_p3  ;;  %s349_s23 = sshll.u32 %s134_s22, 5 }
   0xb   : > { %s359_s24 = sshll.u32 %s467_s15, 9  ;;  %s138_s28 = scalar_lea.vmem [#allocation2], %s349_s23 }
   0xc   : > { %s606_s21 = scalar_select %p530_p7, 1, 0 }
   0xd   : > { %s539_s27 = scalar_lea.hbm %s601_s0, %s359_s24  ;;  %s145_s29 = sshll.u32 %s138_s28, 4  ;;  %s541_s29 = int_to_ptr.vmem [resolvable:$true] %s145_s29 }
   0xe   : > { %p543_p8 = pnand %p367_p6, %p32_p4  ;;  %s548_s4 = scalar_lea.sflag [#allocation3], %s134_s22 }
   0xf   : > { %s405_s5 = scalar_lea.hbm %s539_s27, 512  ;;  %s410_s8 = scalar_lea.hbm %s601_s0, 1024 }
  0x10   : > { %p406_p10 = scmp.ne.s32.totalorder %s539_s27, %s405_s5  ;;  %p407_p11 = pneg %p543_p8 }
  0x11   : > { %p411_p0 = scmp.lt.s32.totalorder %s539_s27, %s601_s0  ;;  %p412_p1 = scmp.lt.s32.totalorder %s410_s8, %s405_s5 }
  0x12   : > { %p408_p12 = pnand %p407_p11, %p406_p10 }
  0x13   : > { %p413_p2 = por %p412_p1, %p411_p0 }
  0x14   : > { %p409_p13 = pneg %p408_p12 }
  0x16   : > { %p414_p3 = pnand %p413_p2, %p409_p13 }
  0x18   : > { %417 = shalt.err (!%p414_p3)
}
  0x19   : > { %s418_s11 = scalar_lea.vmem %s541_s29, 512  ;;  %s469_s12 = smov [#allocation2]  }
  0x1a   : > { %p419_p4 = scmp.ne.s32.totalorder %s541_s29, %s418_s11  ;;  %s423_s18 = sshll.u32 %s469_s12, 4  ;;  %s424_s18 = int_to_ptr.vmem [resolvable:$false] %s423_s18 }
  0x1b   : > { %s425_s19 = scalar_lea.vmem %s424_s18, 1024  ;;  %p426_p10 = scmp.lt.s32.totalorder %s541_s29, %s424_s18 }
  0x1c   : > { %p421_p5 = pnand %p419_p4, %p407_p11  ;;  %p427_p12 = scmp.lt.s32.totalorder %s425_s19, %s418_s11 }
  0x1e   : > { %p422_p6 = pneg %p421_p5  ;;  %p428_p9 = por %p427_p12, %p426_p10 }
  0x20   : > { %p429_p7 = pnand %p428_p9, %p422_p6 }
  0x22   : > { %432 = shalt.err (!%p429_p7)
}
  0x23   : > { %s470_s22 = smov 256   ;;  %s471_s23 = smov 16  }
  0x24   : > { %366 = dma.hbm_to_vmem [thread:$0]  (!%p543_p8), %s539_s27, 512, %s541_s29, %s548_s4, %s470_s22, %s470_s22, %s471_s23  }
  0x25   : > { %p153_p11 = scmp.lt.s32.totalorder %s467_s15, 3  ;;  %p608_p13 = scmp.ge.s32.totalorder %s467_s15, 1 }
  0x27   : > { %p154_p0 = pnand %p608_p13, %p153_p11 }
  0x28   : > { %s159_s24 = sand.u32 (!%p154_p0), 1, %s459_s13   ;;  %p609_p7 = scmp.ne.s32.totalorder (!%p154_p0), %s606_s21, 0 }
  0x29   : > { %157 = sbr.rel (%p154_p0) target bundleno = 251 (0xfb), region = 32  ;;  %s353_s25 = sshll.u32 (!%p154_p0), %s159_s24, 5 }
  0x2a   : > { %s160_s26 = scalar_lea.sflag (!%p154_p0), [#allocation3], %s159_s24  ;;  %s163_s28 = scalar_lea.vmem (!%p154_p0), [#allocation2], %s353_s25 }
  0x2e   : > { %450 = dma.done.wait (%p609_p7), %s160_s26, 512  }
  0x2f   : > { %452 = vsyncadd (%p609_p7), %s160_s26, 4294966784  ;;  %v472_v0 = vmov 0.0   ;;  %v473_v1 = vmov 0   ;;  %v195_v2 = vld [vmem:[%s163_s28 + $0x18] sm:$0xff]  ;;  %v194_v3 = vld [vmem:[%s163_s28 + $0x10] sm:$0xff]  ;;  %vm202_vm0 = vcmask 130048  }
  0x30   : > { %270 = vmatprep.mubr.f32.mxu0 %v472_v0  ;;  %404 = vset.pattern.permute.xlu0 %v473_v1  ;;  %v193_v4 = vld [vmem:[%s163_s28 + $0x8] sm:$0xff]  ;;  %v192_v5 = vld [vmem:[%s163_s28] sm:$0xff]  ;;  %p186_p8 = scmp.lt.s32.totalorder %s513_s16, 1 }
  0x31   : > { %234 = vmatprep.subr.mxu0 %v195_v2  ;;  %v196_v6 = vld [vmem:[%s603_s2] sm:$0x1f] }
  0x32   : > { %235 = vmatpush1.msra.mxu0 %v194_v3  ;;  %v191_v7 = vld [vmem:[%s602_s1] sm:$0x1f]  ;;  %199 = vperm.xlu0 %404, %v196_v6   ;;  %s615_s16 = smov (!%p186_p8, %s513_s16), 1 }
  0x33   : > { %236 = vmatprep.subr.mxu0 %v193_v4  ;;  %s360_s21 = sshll.u32 %s615_s16, 4 }
  0x34   : > { %237 = vmatpush1.msra.mxu0 %v192_v5  ;;  %s190_s6 = scalar_lea.vmem %s604_s3, %s360_s21 }
  0x35   : > { %356 = vmatmul.mubr.msk.f32.vlgmr.msra.gmra.mxu0 %vm202_vm0, %v191_v7 }
  0xad   : > { %v200_v8 = vpop.permute.xlu0 %199 }
  0xf5   : > { %v272_v9 = vpop.f32.mrf.mxu0 }
  0xf6   : > { %v273_v10 = vadd.f32 %v272_v9, %v200_v8 }
  0xf7   : > { %v274_v11 = vpop.f32.mrf.mxu0 }
  0xf8   : > { %277 = vst [vmem:[%s190_s6] sm:$0x1f] %v273_v10  ;;  %v275_v12 = vadd.f32 %v274_v11, %v200_v8 }
  0xfa   : > { %278 = vst [vmem:[%s190_s6 + $0x8] sm:$0x1f] %v275_v12 }
  0xfb PF: > { %p13_p9 = scmp.ge.s32.totalorder %s516_s17, 4   ;;  %s610_s12 = smov %s459_s13 }
  0xfc   : > { %s611_s13 = smov %s463_s14  ;;  %s612_s14 = smov %s526_s20 }
  0xfd   : > { %s613_s15 = smov %s516_s17  ;;  %15 = sbr.rel (!%p13_p9) target bundleno = 3 (0x3), region = 72 }
 0x102   :  { %300 = vsyncpa [#allocation3], 1 }
 0x103   :  { %302 = vsyncpa [#allocation3 + $0x1], 1 }

</bundles_post_ra>
